<compile_context>
chip_gen: v7x
topology: tpu7x:2x2x1
jax: 0.10.0
libtpu: 0.0.40
codegen_flags: <defaults>
</compile_context>

<pallas_src>
import functools
import math

import jax
import jax.numpy as jnp
import numpy as np
from jax import lax
from jax.experimental import pallas as pl
from jax.experimental.pallas import tpu as pltpu

# Rows of the packed "small parameter" slab (shape (VEC_ROWS, D), f32).
(ROW_AW, ROW_AB, ROW_G1, ROW_BE1, ROW_BB1, ROW_BB2, ROW_BB3, ROW_G2, ROW_BE2) = range(9)
VEC_ROWS = 9
# Planes of the packed DxD weight slab (shape (N_MATS, D, D), bf16), each stored [in, out].
(W_WQ, W_WK, W_W1, W_W2, W_W3) = range(5)
N_MATS = 5


def stack_attention_kernel(x_ref, lab_ref, len_ref, w_ref, vec_ref, out_ref,
                           *, n_classes, inv_scale):
    f32 = jnp.float32
    bf16 = jnp.bfloat16

    x = x_ref[...]                          # (B, S, D) f32
    B, S, D = x.shape
    C = n_classes

    # ---- unpack the two parameter slabs (static slices, no extra DMAs) -----
    vec = vec_ref[...]                      # (VEC_ROWS, D) f32
    aw  = vec[ROW_AW:ROW_AW + 1, :C]        # (1, C)  attn_linear.weight
    ab  = vec[ROW_AB:ROW_AB + 1, 0:1]       # (1, 1)  attn_linear.bias
    g1  = vec[ROW_G1:ROW_G1 + 1, :]         # (1, D)  layer_norm1.weight
    be1 = vec[ROW_BE1:ROW_BE1 + 1, :]       # (1, D)  layer_norm1.bias
    bb1 = vec[ROW_BB1:ROW_BB1 + 1, :]
    bb2 = vec[ROW_BB2:ROW_BB2 + 1, :]
    bb3 = vec[ROW_BB3:ROW_BB3 + 1, :]
    g2  = vec[ROW_G2:ROW_G2 + 1, :]
    be2 = vec[ROW_BE2:ROW_BE2 + 1, :]

    wq_bf = w_ref[W_WQ]                     # (D, D) bf16, stored [in, out]
    wk_bf = w_ref[W_WK]
    w1 = w_ref[W_W1]
    w2 = w_ref[W_W2]
    w3 = w_ref[W_W3]

    # ---- fused attention-score path (exact algebra; tiny, kept in f32) -----
    # Upcasting Wq/Wk here is two (D,D) VPU casts — cheap — and keeps the
    # softmax inputs at f32 matmul precision.
    wq_f = wq_bf.astype(f32)
    wk_f = wk_bf.astype(f32)
    k = jnp.dot(lab_ref[...], wk_f, preferred_element_type=f32)          # (C, D)
    u = jnp.dot(aw, k, preferred_element_type=f32)                       # (1, D)
    # v_row[0, i] = sum_o Wq[i, o] * u[0, o] / scale
    v_row = lax.dot_general(u, wq_f, (((1,), (1,)), ((), ())),
                            preferred_element_type=f32) * inv_scale      # (1, D)
    logits = jnp.sum(x * v_row[None, :, :], axis=-1) + ab                # (B, S)

    # ---- masked softmax over S; mask built in-kernel from SMEM lengths -----
    # Finite -1e30 (not -inf): fully-masked rows give uniform 1/S, never NaN.
    b_iota = lax.broadcasted_iota(jnp.int32, (B, S), 0)
    s_iota = lax.broadcasted_iota(jnp.int32, (B, S), 1)
    lens = jnp.zeros((B, S), jnp.int32)
    for b in range(B):                      # B is static; tiny unrolled select
        lens = jnp.where(b_iota == b, len_ref[b], lens)
    logits = jnp.where(s_iota < lens, logits, jnp.float32(-1e30))

    m = jnp.max(logits, axis=-1, keepdims=True)
    e = jnp.exp(logits - m)
    p = e * pl.reciprocal(jnp.sum(e, axis=-1, keepdims=True), approx=True)  # (B, S)

    # ---- weighted sum, then the (deferred) query projection ----------------
    ctx = jnp.sum(p[:, :, None] * x, axis=1)                             # (B, D) f32
    out = jnp.dot(ctx.astype(bf16), wq_bf, preferred_element_type=f32)   # (B, D)

    def layer_norm(v, g, b):
        # eps = 1e-12 matches the PyTorch module (explicitly set, not default).
        mu = jnp.mean(v, axis=-1, keepdims=True)
        var = jnp.mean((v - mu) * (v - mu), axis=-1, keepdims=True)
        return (v - mu) * lax.rsqrt(var + 1e-12) * g + b

    residual = layer_norm(out + x[:, 0, :], g1, be1)                     # (B, D)

    # ---- 3-layer MLP: bf16 MXU operands, f32 accumulation, f32 VPU math ----
    h = jnp.dot(out.astype(bf16), w1, preferred_element_type=f32) + bb1
    h = jnp.maximum(h, 0.0)
    h = jnp.dot(h.astype(bf16), w2, preferred_element_type=f32) + bb2
    h = jnp.maximum(h, 0.0)
    h = jnp.dot(h.astype(bf16), w3, preferred_element_type=f32) + bb3

    # TODO(synk): when D scales, pad the output last dim to a multiple of 128
    # in the wrapper for unmasked vst; not worth an extra XLA slice at D=32.
    out_ref[...] = layer_norm(h + residual, g2, be2)


def stack_attention_layer(x, lab, lengths, params):
    """lengths: (B,) int32 valid sequence lengths (prefix attn_mask)."""
    B, S, D = x.shape
    C = lab.shape[0]

    kernel = functools.partial(stack_attention_kernel,
                               n_classes=C, inv_scale=1.0 / math.sqrt(D))

    # Gridless call: everything is a single VMEM/SMEM resident, no pipeline
    # prologue/epilogue, no double-buffering.  ~15 KiB total (weights bf16).
    return pl.pallas_call(
        kernel,
        out_shape=jax.ShapeDtypeStruct((B, D), jnp.float32),
        in_specs=[
            pl.BlockSpec(memory_space=pltpu.MemorySpace.VMEM),   # input_feats (B,S,D) f32
            pl.BlockSpec(memory_space=pltpu.MemorySpace.VMEM),   # label_feats (C,D) f32
            pl.BlockSpec(memory_space=pltpu.MemorySpace.SMEM),   # lengths (B,) int32
            pl.BlockSpec(memory_space=pltpu.MemorySpace.VMEM),   # packed DxD weights (5,D,D) bf16
            pl.BlockSpec(memory_space=pltpu.MemorySpace.VMEM),   # packed small params (9,D) f32
        ],
        out_specs=pl.BlockSpec(memory_space=pltpu.MemorySpace.VMEM),
    )(x, lab, lengths, params["w"], params["vec"])


def make_params(key, embeds_dim, n_classes):
    """Parameters pre-packed into a bf16 DxD slab and an f32 small-param slab."""
    D, C = embeds_dim, n_classes
    ks = jax.random.split(key, 14)

    def init(k, shape, fan_in):
        bound = 1.0 / math.sqrt(fan_in)
        return jax.random.uniform(k, shape, jnp.float32, -bound, bound)

    wq = init(ks[0], (D, D), D)     # linear_query.weight.T  ([in, out])
    wk = init(ks[1], (D, D), D)     # linear_key.weight.T
    w1 = init(ks[2], (D, D), D)     # mlp[0].weight.T
    w2 = init(ks[3], (D, D), D)     # mlp[2].weight.T
    w3 = init(ks[4], (D, D), D)     # mlp[4].weight.T
    aw = init(ks[5], (C,), C)       # attn_linear.weight (squeezed)
    ab = init(ks[6], (), C)         # attn_linear.bias
    bb1 = init(ks[7], (D,), D)
    bb2 = init(ks[8], (D,), D)
    bb3 = init(ks[9], (D,), D)
    # Non-trivial LayerNorm affine params so the test exercises them.
    g1  = 1.0 + 0.1 * jax.random.normal(ks[10], (D,), jnp.float32)
    be1 = 0.1 * jax.random.normal(ks[11], (D,), jnp.float32)
    g2  = 1.0 + 0.1 * jax.random.normal(ks[12], (D,), jnp.float32)
    be2 = 0.1 * jax.random.normal(ks[13], (D,), jnp.float32)

    # bf16 weight slab: halves the dominant DMA (5*D^2 bytes -> 2 bytes/elem).
    w_slab = jnp.stack([wq, wk, w1, w2, w3], axis=0).astype(jnp.bfloat16)   # (5, D, D)

    vec_slab = jnp.zeros((VEC_ROWS, D), jnp.float32)
    vec_slab = vec_slab.at[ROW_AW, :C].set(aw)
    vec_slab = vec_slab.at[ROW_AB, 0].set(ab)
    vec_slab = vec_slab.at[ROW_G1].set(g1)
    vec_slab = vec_slab.at[ROW_BE1].set(be1)
    vec_slab = vec_slab.at[ROW_BB1].set(bb1)
    vec_slab = vec_slab.at[ROW_BB2].set(bb2)
    vec_slab = vec_slab.at[ROW_BB3].set(bb3)
    vec_slab = vec_slab.at[ROW_G2].set(g2)
    vec_slab = vec_slab.at[ROW_BE2].set(be2)

    return {"w": w_slab, "vec": vec_slab}


def reference(x, lab, mask, params, n_classes):
    """Pure-JAX f32 reference of the PyTorch forward (original op order).

    Uses the bf16-rounded weights upcast to f32 so the comparison isolates
    kernel math (bf16 activations / approx reciprocal), not storage rounding.
    """
    D = x.shape[-1]
    C = n_classes
    w = params["w"].astype(jnp.float32)
    vec = params["vec"]
    wq, wk = w[W_WQ], w[W_WK]
    w1, w2, w3 = w[W_W1], w[W_W2], w[W_W3]
    aw, ab = vec[ROW_AW, :C], vec[ROW_AB, 0]
    g1, be1 = vec[ROW_G1], vec[ROW_BE1]
    bb1, bb2, bb3 = vec[ROW_BB1], vec[ROW_BB2], vec[ROW_BB3]
    g2, be2 = vec[ROW_G2], vec[ROW_BE2]

    scale = math.sqrt(D)
    residual = x[:, 0, :]
    q = x @ wq
    k = lab @ wk
    dp = jnp.einsum("bsd,cd->bsc", q, k) / scale
    attn = jnp.einsum("bsc,c->bs", dp, aw) + ab
    attn = jnp.where(mask == 0.0, -jnp.inf, attn)
    attn = jax.nn.softmax(attn, axis=-1)
    out = jnp.einsum("bs,bsd->bd", attn, q)

    def ln(v, g, b):
        mu = jnp.mean(v, -1, keepdims=True)
        var = jnp.mean((v - mu) ** 2, -1, keepdims=True)
        return (v - mu) / jnp.sqrt(var + 1e-12) * g + b

    residual = ln(out + residual, g1, be1)
    h = jnp.maximum(out @ w1 + bb1, 0.0)
    h = jnp.maximum(h @ w2 + bb2, 0.0)
    h = h @ w3 + bb3
    return ln(h + residual, g2, be2)


if __name__ == "__main__":
    B, S, D, C = 2, 8, 32, 4   # batch, seq, embeds_dim, n_classes

    key = jax.random.PRNGKey(0)
    kx, kl, kp = jax.random.split(key, 3)

    input_feats = jax.random.normal(kx, (B, S, D), jnp.float32)
    label_feats = jax.random.normal(kl, (C, D), jnp.float32)
    lengths = jnp.array([S, 5], dtype=jnp.int32)           # prefix attn_mask lengths

    params = make_params(kp, D, C)

    out = stack_attention_layer(input_feats, label_feats, lengths, params)
    out = jax.block_until_ready(out)

    attn_mask = (jnp.arange(S)[None, :] < lengths[:, None]).astype(jnp.float32)
    ref = reference(input_feats, label_feats, attn_mask, params, C)

    # Tolerance sized for bf16 MXU activations (f32 accumulation) + approx
    # softmax reciprocal vs. the pure-f32 reference; real bugs show O(1) errors.
    np.testing.assert_allclose(np.asarray(out), np.asarray(ref), rtol=2e-2, atol=2e-2)

    print("KERNEL_OK")
</pallas_src>

<mosaic_0001>
module attributes {stable_mosaic.version = 11 : i64} {
  func.func @stack_attention_kernel(%arg0: memref<2x8x32xf32, #tpu.memory_space<vmem>>, %arg1: memref<4x32xf32, #tpu.memory_space<vmem>>, %arg2: memref<2xi32, #tpu.memory_space<smem>>, %arg3: memref<5x32x32xbf16, #tpu.memory_space<vmem>>, %arg4: memref<9x32xf32, #tpu.memory_space<vmem>>, %arg5: memref<2x32xf32, #tpu.memory_space<vmem>>) attributes {dimension_semantics = [], scalar_prefetch = 0 : i64, scratch_operands = 0 : i64, tpu.core_type = #tpu.core_type<tc>} {
    %c0 = arith.constant 0 : index
    %c0_0 = arith.constant 0 : index
    %c0_1 = arith.constant 0 : index
    %0 = vector.load %arg0[%c0, %c0_0, %c0_1] : memref<2x8x32xf32, #tpu.memory_space<vmem>>, vector<2x8x32xf32>
    %c0_2 = arith.constant 0 : index
    %c0_3 = arith.constant 0 : index
    %1 = vector.load %arg4[%c0_2, %c0_3] : memref<9x32xf32, #tpu.memory_space<vmem>>, vector<9x32xf32>
    %2 = vector.extract_strided_slice %1 {offsets = [0, 0], sizes = [1, 4], strides = [1, 1]} : vector<9x32xf32> to vector<1x4xf32>
    %3 = vector.extract_strided_slice %1 {offsets = [1, 0], sizes = [1, 1], strides = [1, 1]} : vector<9x32xf32> to vector<1x1xf32>
    %4 = vector.extract_strided_slice %1 {offsets = [2, 0], sizes = [1, 32], strides = [1, 1]} : vector<9x32xf32> to vector<1x32xf32>
    %5 = vector.extract_strided_slice %1 {offsets = [3, 0], sizes = [1, 32], strides = [1, 1]} : vector<9x32xf32> to vector<1x32xf32>
    %6 = vector.extract_strided_slice %1 {offsets = [4, 0], sizes = [1, 32], strides = [1, 1]} : vector<9x32xf32> to vector<1x32xf32>
    %7 = vector.extract_strided_slice %1 {offsets = [5, 0], sizes = [1, 32], strides = [1, 1]} : vector<9x32xf32> to vector<1x32xf32>
    %8 = vector.extract_strided_slice %1 {offsets = [6, 0], sizes = [1, 32], strides = [1, 1]} : vector<9x32xf32> to vector<1x32xf32>
    %9 = vector.extract_strided_slice %1 {offsets = [7, 0], sizes = [1, 32], strides = [1, 1]} : vector<9x32xf32> to vector<1x32xf32>
    %10 = vector.extract_strided_slice %1 {offsets = [8, 0], sizes = [1, 32], strides = [1, 1]} : vector<9x32xf32> to vector<1x32xf32>
    %c0_4 = arith.constant 0 : index
    %c0_5 = arith.constant 0 : index
    %c0_6 = arith.constant 0 : index
    %11 = vector.load %arg3[%c0_4, %c0_5, %c0_6] : memref<5x32x32xbf16, #tpu.memory_space<vmem>>, vector<1x32x32xbf16>
    %12 = vector.shape_cast %11 : vector<1x32x32xbf16> to vector<32x32xbf16>
    %c1 = arith.constant 1 : index
    %c0_7 = arith.constant 0 : index
    %c0_8 = arith.constant 0 : index
    %13 = vector.load %arg3[%c1, %c0_7, %c0_8] : memref<5x32x32xbf16, #tpu.memory_space<vmem>>, vector<1x32x32xbf16>
    %14 = vector.shape_cast %13 : vector<1x32x32xbf16> to vector<32x32xbf16>
    %c2 = arith.constant 2 : index
    %c0_9 = arith.constant 0 : index
    %c0_10 = arith.constant 0 : index
    %15 = vector.load %arg3[%c2, %c0_9, %c0_10] : memref<5x32x32xbf16, #tpu.memory_space<vmem>>, vector<1x32x32xbf16>
    %16 = vector.shape_cast %15 : vector<1x32x32xbf16> to vector<32x32xbf16>
    %c3 = arith.constant 3 : index
    %c0_11 = arith.constant 0 : index
    %c0_12 = arith.constant 0 : index
    %17 = vector.load %arg3[%c3, %c0_11, %c0_12] : memref<5x32x32xbf16, #tpu.memory_space<vmem>>, vector<1x32x32xbf16>
    %18 = vector.shape_cast %17 : vector<1x32x32xbf16> to vector<32x32xbf16>
    %c4 = arith.constant 4 : index
    %c0_13 = arith.constant 0 : index
    %c0_14 = arith.constant 0 : index
    %19 = vector.load %arg3[%c4, %c0_13, %c0_14] : memref<5x32x32xbf16, #tpu.memory_space<vmem>>, vector<1x32x32xbf16>
    %20 = vector.shape_cast %19 : vector<1x32x32xbf16> to vector<32x32xbf16>
    %21 = arith.extf %12 : vector<32x32xbf16> to vector<32x32xf32>
    %22 = arith.extf %14 : vector<32x32xbf16> to vector<32x32xf32>
    %c0_15 = arith.constant 0 : index
    %c0_16 = arith.constant 0 : index
    %23 = vector.load %arg1[%c0_15, %c0_16] : memref<4x32xf32, #tpu.memory_space<vmem>>, vector<4x32xf32>
    %cst = arith.constant dense<0.000000e+00> : vector<4x32xf32>
    %24 = tpu.matmul %23, %22, %cst {dimension_numbers = #tpu.dot_dimension_numbers<[1], [0], [0], [1], [0, 0, 1, 1], [], []>} : vector<4x32xf32>, vector<32x32xf32>, vector<4x32xf32> -> vector<4x32xf32>
    %cst_17 = arith.constant dense<0.000000e+00> : vector<1x32xf32>
    %25 = tpu.matmul %2, %24, %cst_17 {dimension_numbers = #tpu.dot_dimension_numbers<[1], [0], [0], [1], [0, 0, 1, 1], [], []>} : vector<1x4xf32>, vector<4x32xf32>, vector<1x32xf32> -> vector<1x32xf32>
    %cst_18 = arith.constant dense<0.000000e+00> : vector<1x32xf32>
    %26 = tpu.matmul %25, %21, %cst_18 {dimension_numbers = #tpu.dot_dimension_numbers<[1], [1], [0], [0], [0, 0, 1, 0], [], []>} : vector<1x32xf32>, vector<32x32xf32>, vector<1x32xf32> -> vector<1x32xf32>
    %cst_19 = arith.constant 0.176776692 : f32
    %27 = vector.broadcast %cst_19 : f32 to vector<1x32xf32>
    %28 = arith.mulf %26, %27 : vector<1x32xf32>
    %29 = vector.shape_cast %28 : vector<1x32xf32> to vector<1x1x32xf32>
    %30 = vector.broadcast %29 : vector<1x1x32xf32> to vector<2x8x32xf32>
    %31 = arith.mulf %0, %30 : vector<2x8x32xf32>
    %cst_20 = arith.constant dense<0.000000e+00> : vector<2x8xf32>
    %32 = vector.multi_reduction <add>, %31, %cst_20 [2] : vector<2x8x32xf32> to vector<2x8xf32>
    %33 = vector.broadcast %3 : vector<1x1xf32> to vector<2x8xf32>
    %34 = arith.addf %32, %33 : vector<2x8xf32>
    %35 = tpu.iota {dimensions = array<i32: 0>} : vector<2x8xi32>
    %36 = tpu.iota {dimensions = array<i32: 1>} : vector<2x8xi32>
    %c0_i32 = arith.constant 0 : i32
    %37 = vector.broadcast %c0_i32 : i32 to vector<2x8xi32>
    %c0_i32_21 = arith.constant 0 : i32
    %38 = vector.broadcast %c0_i32_21 : i32 to vector<2x8xi32>
    %39 = arith.cmpi eq, %35, %38 : vector<2x8xi32>
    %c0_22 = arith.constant 0 : index
    %40 = memref.load %arg2[%c0_22] : memref<2xi32, #tpu.memory_space<smem>>
    %41 = vector.broadcast %40 : i32 to vector<2x8xi32>
    %42 = arith.select %39, %41, %37 : vector<2x8xi1>, vector<2x8xi32>
    %c1_i32 = arith.constant 1 : i32
    %43 = vector.broadcast %c1_i32 : i32 to vector<2x8xi32>
    %44 = arith.cmpi eq, %35, %43 : vector<2x8xi32>
    %c1_23 = arith.constant 1 : index
    %45 = memref.load %arg2[%c1_23] : memref<2xi32, #tpu.memory_space<smem>>
    %46 = vector.broadcast %45 : i32 to vector<2x8xi32>
    %47 = arith.select %44, %46, %42 : vector<2x8xi1>, vector<2x8xi32>
    %48 = arith.cmpi slt, %36, %47 : vector<2x8xi32>
    %cst_24 = arith.constant -1.000000e+30 : f32
    %49 = vector.broadcast %cst_24 : f32 to vector<2x8xf32>
    %50 = arith.select %48, %34, %49 : vector<2x8xi1>, vector<2x8xf32>
    %cst_25 = arith.constant dense<0xFF800000> : vector<2xf32>
    %51 = vector.multi_reduction <maximumf>, %50, %cst_25 [1] : vector<2x8xf32> to vector<2xf32>
    %52 = vector.shape_cast %51 : vector<2xf32> to vector<2x1xf32>
    %53 = vector.broadcast %52 : vector<2x1xf32> to vector<2x8xf32>
    %54 = arith.subf %50, %53 : vector<2x8xf32>
    %55 = math.exp %54 : vector<2x8xf32>
    %cst_26 = arith.constant dense<0.000000e+00> : vector<2xf32>
    %56 = vector.multi_reduction <add>, %55, %cst_26 [1] : vector<2x8xf32> to vector<2xf32>
    %57 = vector.shape_cast %56 : vector<2xf32> to vector<2x1xf32>
    %58 = tpu.reciprocal %57 {approx = true} : vector<2x1xf32> -> vector<2x1xf32>
    %59 = vector.broadcast %58 : vector<2x1xf32> to vector<2x8xf32>
    %60 = arith.mulf %55, %59 : vector<2x8xf32>
    %61 = vector.shape_cast %60 : vector<2x8xf32> to vector<2x8x1xf32>
    %62 = vector.broadcast %61 : vector<2x8x1xf32> to vector<2x8x32xf32>
    %63 = arith.mulf %62, %0 : vector<2x8x32xf32>
    %cst_27 = arith.constant dense<0.000000e+00> : vector<2x32xf32>
    %64 = vector.multi_reduction <add>, %63, %cst_27 [1] : vector<2x8x32xf32> to vector<2x32xf32>
    %65 = arith.truncf %64 : vector<2x32xf32> to vector<2x32xbf16>
    %cst_28 = arith.constant dense<0.000000e+00> : vector<2x32xf32>
    %66 = tpu.matmul %65, %12, %cst_28 {dimension_numbers = #tpu.dot_dimension_numbers<[1], [0], [0], [1], [0, 0, 1, 1], [], []>} : vector<2x32xbf16>, vector<32x32xbf16>, vector<2x32xf32> -> vector<2x32xf32>
    %67 = vector.extract_strided_slice %0 {offsets = [0, 0, 0], sizes = [2, 1, 32], strides = [1, 1, 1]} : vector<2x8x32xf32> to vector<2x1x32xf32>
    %68 = vector.shape_cast %67 : vector<2x1x32xf32> to vector<2x32xf32>
    %69 = arith.addf %66, %68 : vector<2x32xf32>
    %cst_29 = arith.constant dense<0.000000e+00> : vector<2xf32>
    %70 = vector.multi_reduction <add>, %69, %cst_29 [1] : vector<2x32xf32> to vector<2xf32>
    %71 = vector.shape_cast %70 : vector<2xf32> to vector<2x1xf32>
    %cst_30 = arith.constant 3.200000e+01 : f32
    %72 = vector.broadcast %cst_30 : f32 to vector<2x1xf32>
    %73 = arith.divf %71, %72 : vector<2x1xf32>
    %74 = vector.broadcast %73 : vector<2x1xf32> to vector<2x32xf32>
    %75 = arith.subf %69, %74 : vector<2x32xf32>
    %76 = vector.broadcast %73 : vector<2x1xf32> to vector<2x32xf32>
    %77 = arith.subf %69, %76 : vector<2x32xf32>
    %78 = arith.mulf %75, %77 : vector<2x32xf32>
    %cst_31 = arith.constant dense<0.000000e+00> : vector<2xf32>
    %79 = vector.multi_reduction <add>, %78, %cst_31 [1] : vector<2x32xf32> to vector<2xf32>
    %80 = vector.shape_cast %79 : vector<2xf32> to vector<2x1xf32>
    %cst_32 = arith.constant 3.200000e+01 : f32
    %81 = vector.broadcast %cst_32 : f32 to vector<2x1xf32>
    %82 = arith.divf %80, %81 : vector<2x1xf32>
    %83 = vector.broadcast %73 : vector<2x1xf32> to vector<2x32xf32>
    %84 = arith.subf %69, %83 : vector<2x32xf32>
    %cst_33 = arith.constant 9.99999996E-13 : f32
    %85 = vector.broadcast %cst_33 : f32 to vector<2x1xf32>
    %86 = arith.addf %82, %85 : vector<2x1xf32>
    %87 = math.rsqrt %86 : vector<2x1xf32>
    %88 = vector.broadcast %87 : vector<2x1xf32> to vector<2x32xf32>
    %89 = arith.mulf %84, %88 : vector<2x32xf32>
    %90 = vector.broadcast %4 : vector<1x32xf32> to vector<2x32xf32>
    %91 = arith.mulf %89, %90 : vector<2x32xf32>
    %92 = vector.broadcast %5 : vector<1x32xf32> to vector<2x32xf32>
    %93 = arith.addf %91, %92 : vector<2x32xf32>
    %94 = arith.truncf %66 : vector<2x32xf32> to vector<2x32xbf16>
    %cst_34 = arith.constant dense<0.000000e+00> : vector<2x32xf32>
    %95 = tpu.matmul %94, %16, %cst_34 {dimension_numbers = #tpu.dot_dimension_numbers<[1], [0], [0], [1], [0, 0, 1, 1], [], []>} : vector<2x32xbf16>, vector<32x32xbf16>, vector<2x32xf32> -> vector<2x32xf32>
    %96 = vector.broadcast %6 : vector<1x32xf32> to vector<2x32xf32>
    %97 = arith.addf %95, %96 : vector<2x32xf32>
    %cst_35 = arith.constant 0.000000e+00 : f32
    %98 = vector.broadcast %cst_35 : f32 to vector<2x32xf32>
    %99 = arith.maximumf %97, %98 : vector<2x32xf32>
    %100 = arith.truncf %99 : vector<2x32xf32> to vector<2x32xbf16>
    %cst_36 = arith.constant dense<0.000000e+00> : vector<2x32xf32>
    %101 = tpu.matmul %100, %18, %cst_36 {dimension_numbers = #tpu.dot_dimension_numbers<[1], [0], [0], [1], [0, 0, 1, 1], [], []>} : vector<2x32xbf16>, vector<32x32xbf16>, vector<2x32xf32> -> vector<2x32xf32>
    %102 = vector.broadcast %7 : vector<1x32xf32> to vector<2x32xf32>
    %103 = arith.addf %101, %102 : vector<2x32xf32>
    %cst_37 = arith.constant 0.000000e+00 : f32
    %104 = vector.broadcast %cst_37 : f32 to vector<2x32xf32>
    %105 = arith.maximumf %103, %104 : vector<2x32xf32>
    %106 = arith.truncf %105 : vector<2x32xf32> to vector<2x32xbf16>
    %cst_38 = arith.constant dense<0.000000e+00> : vector<2x32xf32>
    %107 = tpu.matmul %106, %20, %cst_38 {dimension_numbers = #tpu.dot_dimension_numbers<[1], [0], [0], [1], [0, 0, 1, 1], [], []>} : vector<2x32xbf16>, vector<32x32xbf16>, vector<2x32xf32> -> vector<2x32xf32>
    %108 = vector.broadcast %8 : vector<1x32xf32> to vector<2x32xf32>
    %109 = arith.addf %107, %108 : vector<2x32xf32>
    %110 = arith.addf %109, %93 : vector<2x32xf32>
    %cst_39 = arith.constant dense<0.000000e+00> : vector<2xf32>
    %111 = vector.multi_reduction <add>, %110, %cst_39 [1] : vector<2x32xf32> to vector<2xf32>
    %112 = vector.shape_cast %111 : vector<2xf32> to vector<2x1xf32>
    %cst_40 = arith.constant 3.200000e+01 : f32
    %113 = vector.broadcast %cst_40 : f32 to vector<2x1xf32>
    %114 = arith.divf %112, %113 : vector<2x1xf32>
    %115 = vector.broadcast %114 : vector<2x1xf32> to vector<2x32xf32>
    %116 = arith.subf %110, %115 : vector<2x32xf32>
    %117 = vector.broadcast %114 : vector<2x1xf32> to vector<2x32xf32>
    %118 = arith.subf %110, %117 : vector<2x32xf32>
    %119 = arith.mulf %116, %118 : vector<2x32xf32>
    %cst_41 = arith.constant dense<0.000000e+00> : vector<2xf32>
    %120 = vector.multi_reduction <add>, %119, %cst_41 [1] : vector<2x32xf32> to vector<2xf32>
    %121 = vector.shape_cast %120 : vector<2xf32> to vector<2x1xf32>
    %cst_42 = arith.constant 3.200000e+01 : f32
    %122 = vector.broadcast %cst_42 : f32 to vector<2x1xf32>
    %123 = arith.divf %121, %122 : vector<2x1xf32>
    %124 = vector.broadcast %114 : vector<2x1xf32> to vector<2x32xf32>
    %125 = arith.subf %110, %124 : vector<2x32xf32>
    %cst_43 = arith.constant 9.99999996E-13 : f32
    %126 = vector.broadcast %cst_43 : f32 to vector<2x1xf32>
    %127 = arith.addf %123, %126 : vector<2x1xf32>
    %128 = math.rsqrt %127 : vector<2x1xf32>
    %129 = vector.broadcast %128 : vector<2x1xf32> to vector<2x32xf32>
    %130 = arith.mulf %125, %129 : vector<2x32xf32>
    %131 = vector.broadcast %9 : vector<1x32xf32> to vector<2x32xf32>
    %132 = arith.mulf %130, %131 : vector<2x32xf32>
    %133 = vector.broadcast %10 : vector<1x32xf32> to vector<2x32xf32>
    %134 = arith.addf %132, %133 : vector<2x32xf32>
    %c0_44 = arith.constant 0 : index
    %c0_45 = arith.constant 0 : index
    %135 = vector.load %arg5[%c0_44, %c0_45] : memref<2x32xf32, #tpu.memory_space<vmem>>, vector<2x32xf32>
    tpu.vector_store %arg5[%c0_44, %c0_45], %134 {strides = array<i32>} : memref<2x32xf32, #tpu.memory_space<vmem>>, vector<2x32xf32>,
    return
  }
}

</mosaic_0001>

<bundles_post_ra>
// kernel: tpu_custom_call.1
= control target key start
LH: loop header
LB: loop body
LE: loop exit
PB: predicated region body
PF: predicated region fallthrough
CT: control target
= control target key end

     0   :  { %10 = vsyncpa [#allocation3], 0  ;;  %s1259_s0 = inlined_call_operand.hbm [shape: f32[2,8,32], index: 0, kind: input, shape index: {}]   ;;  %s1260_s1 = inlined_call_operand.hbm [shape: f32[4,32], index: 1, kind: input, shape index: {}]   ;;  %s1261_s2 = inlined_call_operand.vmem [shape: s32[2], index: 2, kind: input, shape index: {}]   ;;  %s1262_s3 = inlined_call_operand.hbm [shape: bf16[5,32,32], index: 3, kind: input, shape index: {}]   ;;  %s1263_s4 = inlined_call_operand.hbm [shape: f32[9,32], index: 4, kind: input, shape index: {}]   ;;  %s1264_s5 = inlined_call_operand.hbm [shape: f32[2,32], index: 5, kind: output, shape index: {}]  }
   0x1   :  { %11 = vsyncpa [#allocation7], 0 }
   0x2   :  { %12 = vsyncpa [#allocation5], 0 }
   0x3   :  { %13 = vsyncpa [#allocation11], 0 }
   0x4   :  { %14 = vsyncpa [#allocation4], 0  ;;  %s1064_s18 = smov [#allocation6]   ;;  %s1065_s20 = smov [#allocation2]  }
   0x5   :  { %s33_s19 = sshll.u32 %s1064_s18, 4  ;;  %s20_s21 = sshll.u32 %s1065_s20, 4  ;;  %s34_s19 = int_to_ptr.vmem [resolvable:$true] %s33_s19  ;;  %s1107_s21 = int_to_ptr.vmem [resolvable:$true] %s20_s21 }
   0x6   :  { %s930_s24 = scalar_lea.hbm %s1260_s1, 64 }
   0x7   :  { %p931_p0 = scmp.ne.s32.totalorder %s1260_s1, %s930_s24  ;;  %p934_p1 = scmp.lt.u32.totalorder %s930_s24, %s1260_s1 }
   0x9   :  { %p936_p2 = pnand %p934_p1, %p931_p0 }
   0xb   :  { %939 = shalt.err (!%p936_p2)
}
   0xc   :  { %s940_s29 = scalar_lea.vmem %s34_s19, 64  ;;  %p945_p4 = scmp.lt.s32.totalorder %s34_s19, %s34_s19 }
   0xd   :  { %p941_p3 = scmp.ne.s32.totalorder %s34_s19, %s940_s29  ;;  %p946_p5 = scmp.lt.s32.totalorder %s940_s29, %s940_s29 }
   0xf   :  { %p947_p6 = por %p946_p5, %p945_p4 }
  0x11   :  { %p948_p7 = pnand %p947_p6, %p941_p3 }
  0x13   :  { %951 = shalt.err (!%p948_p7)
}
  0x14   :  { %36 = dma.hbm_to_vmem [thread:$0]  %s1260_s1, 64, %s34_s19, [#allocation7]  }
  0x15   :  { %s952_s9 = scalar_lea.hbm %s1259_s0, 256 }
  0x16   :  { %p953_p8 = scmp.ne.s32.totalorder %s1259_s0, %s952_s9  ;;  %p956_p9 = scmp.lt.u32.totalorder %s952_s9, %s1259_s0 }
  0x18   :  { %p958_p10 = pnand %p956_p9, %p953_p8 }
  0x1a   :  { %961 = shalt.err (!%p958_p10)
}
  0x1b   :  { %s962_s14 = scalar_lea.vmem %s1107_s21, 256  ;;  %p967_p12 = scmp.lt.s32.totalorder %s1107_s21, %s1107_s21 }
  0x1c   :  { %p963_p11 = scmp.ne.s32.totalorder %s1107_s21, %s962_s14  ;;  %p968_p13 = scmp.lt.s32.totalorder %s962_s14, %s962_s14 }
  0x1e   :  { %p969_p0 = por %p968_p13, %p967_p12 }
  0x20   :  { %p970_p1 = pnand %p969_p0, %p963_p11 }
  0x22   :  { %973 = shalt.err (!%p970_p1)
}
  0x23   :  { %s1066_s1 = smov 128   ;;  %s1067_s15 = smov 8  }
  0x24   :  { %26 = dma.hbm_to_vmem [thread:$0]  %s1259_s0, 256, %s1107_s21, [#allocation3], %s1066_s1, %s1066_s1, %s1067_s15  }
  0x25   :  { %s43_s20 = sshll.u32 %s1261_s2, 4  ;;  %s44_s20 = int_to_ptr.vmem [resolvable:$true] %s43_s20 }
  0x26   :  { %s974_s22 = scalar_lea.vmem %s44_s20, 16  ;;  %p979_p3 = scmp.lt.s32.totalorder %s44_s20, %s44_s20 }
  0x27   :  { %p975_p2 = scmp.ne.s32.totalorder %s44_s20, %s974_s22  ;;  %p980_p4 = scmp.lt.s32.totalorder %s974_s22, %s974_s22 }
  0x29   :  { %p981_p5 = por %p980_p4, %p979_p3 }
  0x2b   :  { %p982_p6 = pnand %p981_p5, %p975_p2 }
  0x2d   :  { %985 = shalt.err (!%p982_p6)
}
  0x2e   :  { %s1068_s23 = smov [#allocation8]   ;;  %s1069_s24 = smov [#allocation9]  }
  0x2f   :  { %46 = dma.vmem_to_smem %s44_s20, 16, %s1068_s23, [#allocation5]  }
  0x30   :  { %s52_s25 = sshll.u32 %s1069_s24, 4  ;;  %s986_s0 = scalar_lea.hbm %s1262_s3, 1280  ;;  %s53_s25 = int_to_ptr.vmem [resolvable:$true] %s52_s25 }
  0x31   :  { %p987_p7 = scmp.ne.s32.totalorder %s1262_s3, %s986_s0  ;;  %p990_p8 = scmp.lt.u32.totalorder %s986_s0, %s1262_s3 }
  0x33   :  { %p992_p9 = pnand %p990_p8, %p987_p7 }
  0x35   :  { %995 = shalt.err (!%p992_p9)
}
  0x36   :  { %s996_s30 = scalar_lea.vmem %s53_s25, 1280  ;;  %p1001_p11 = scmp.lt.s32.totalorder %s53_s25, %s53_s25 }
  0x37   :  { %p997_p10 = scmp.ne.s32.totalorder %s53_s25, %s996_s30  ;;  %p1002_p12 = scmp.lt.s32.totalorder %s996_s30, %s996_s30 }
  0x39   :  { %p1003_p13 = por %p1002_p12, %p1001_p11 }
  0x3b   :  { %p1004_p0 = pnand %p1003_p13, %p997_p10 }
  0x3d   :  { %1007 = shalt.err (!%p1004_p0)
}
  0x3e   :  { %s1070_s6 = smov 64   ;;  %s1071_s7 = smov 4  }
  0x3f   :  { %58 = dma.hbm_to_vmem [thread:$0]  %s1262_s3, 1280, %s53_s25, [#allocation7], %s1070_s6, %s1070_s6, %s1071_s7  }
  0x40   :  { %s1072_s10 = smov [#allocation10]   ;;  %s1008_s14 = scalar_lea.hbm %s1263_s4, 256 }
  0x41   :  { %s64_s11 = sshll.u32 %s1072_s10, 4  ;;  %p1009_p1 = scmp.ne.s32.totalorder %s1263_s4, %s1008_s14  ;;  %s65_s11 = int_to_ptr.vmem [resolvable:$true] %s64_s11 }
  0x42   :  { %p1012_p2 = scmp.lt.u32.totalorder %s1008_s14, %s1263_s4 }
  0x44   :  { %p1014_p3 = pnand %p1012_p2, %p1009_p1 }
  0x46   :  { %1017 = shalt.err (!%p1014_p3)
}
  0x47   :  { %s1018_s20 = scalar_lea.vmem %s65_s11, 256  ;;  %p1023_p5 = scmp.lt.s32.totalorder %s65_s11, %s65_s11 }
  0x48   :  { %p1019_p4 = scmp.ne.s32.totalorder %s65_s11, %s1018_s20  ;;  %p1024_p6 = scmp.lt.s32.totalorder %s1018_s20, %s1018_s20 }
  0x4a   :  { %p1025_p7 = por %p1024_p6, %p1023_p5 }
  0x4c   :  { %p1026_p8 = pnand %p1025_p7, %p1019_p4 }
  0x4e   :  { %1029 = shalt.err (!%p1026_p8)
}
  0x4f   :  { %70 = dma.hbm_to_vmem [thread:$0]  %s1263_s4, 256, %s65_s11, [#allocation11], %s1066_s1, %s1066_s1, %s1067_s15  }
  0x50   :  { %1052 = dma.done.wait [#allocation3], 256  }
  0x51   :  { %1053 = vsyncadd [#allocation3], 4294967040 }
  0x52   :  { %1054 = dma.done.wait [#allocation7], 64  }
  0x53   :  { %1055 = vsyncadd [#allocation7], 4294967232 }
  0x54   :  { %1056 = dma.done.wait [#allocation5], 16  }
  0x55   :  { %1057 = vsyncadd [#allocation5], 4294967280 }
  0x56   :  { %1058 = dma.done.wait [#allocation7], 1280  }
  0x57   :  { %1059 = vsyncadd [#allocation7], 4294966016 }
  0x58   :  { %1060 = dma.done.wait [#allocation11], 256  }
  0x59   :  { %1061 = vsyncadd [#allocation11], 4294967040 }
  0x5a   :  { %86 = sfence }
  0x5b   :  { %v792_v0 = vld [vmem:[#allocation9 + $0x10] sm:$0xff]   ;;  %v1073_v1 = vmov 0.0|0.0   ;;  %v799_v2 = vld [vmem:[#allocation9 + $0x18] sm:$0xff]   ;;  %vm1074_vm0 = vmmov 0   ;;  %v1075_v3 = vmov 0.0   ;;  %vm125_vm1 = vcmask 261120  }
  0x5c   :  { %883 = vmatprep.subr.bf16.mxu0 %v1073_v1  ;;  %832 = vmatprep.mubr.msk.f32.mxu0 %vm1074_vm0, %v1075_v3  ;;  %v124_v4 = vld [vmem:[#allocation6] sm:$0xf]  ;;  %v914_v5 = vld [vmem:[#allocation9] sm:$0xff]   ;;  %v915_v6 = vld [vmem:[#allocation9 + $0x8] sm:$0xff]   ;;  %vm203_vm2 = vcmask 1043456   ;;  %vm199_vm3 = vcmask 31744   ;;  %v363_v13 = vlaneseq }
  0x5d   :  { %885 = vmatpush3.bf16.msra.mxu0 %v792_v0  ;;  %835 = vmatprep.subr.mxu1 %v1075_v3  ;;  %v1182_v7 = vld [vmem:[#allocation10] sm:$0xff]  ;;  %vm891_vm4 = vmpackc.low %vm125_vm1, %vm125_vm1  ;;  %s386_s4 = sld [smem:[#allocation8]]  ;;  %s777_s1 = sld [smem:[#allocation8 + $0x1]]  ;;  %vm404_vm7 = vcmask 1041409   ;;  %vm408_vm9 = vcmask 58368   ;;  %vm519_vm10 = vcmask 254976  }
  0x5e   :  { %886 = vmatprep.subr.bf16.mxu0 %v1073_v1  ;;  %837 = vmatprep.mubr.msk.f32.mxu1 %vm1074_vm0, %v1075_v3  ;;  %v375_v12 = vrot.slane %v1182_v7, 1  ;;  %v1194_v14 = vshrl.u32 %v363_v13, 7  ;;  %v1197_v19 = vld [vmem:[#allocation2] sm:$0xff]  ;;  %v1199_v21 = vld [vmem:[#allocation2 + $0x8] sm:$0xff]  ;;  %v384_v27 = vand.u32 127, %v363_v13  ;;  %s1076_s23 = smov [#allocation12]  }
  0x5f   :  { %s757_s24 = sshll.u32 %s1076_s23, 4  ;;  %s758_s24 = int_to_ptr.vmem [resolvable:$true] %s757_s24 }
  0x60   :  { %899 = vpush %v375_v12  ;;  %v365_v15 = vsub.s32 0, %v1194_v14  ;;  %vm385_vm5 = vcmp.eq.s32.totalorder %v1194_v14, 0  ;;  %vm389_vm6 = vcmp.eq.s32.totalorder %v1194_v14, 1  ;;  %v398_v32 = vsub.s32 %v384_v27, %v1194_v14  ;;  %s1030_s25 = scalar_lea.vmem %s758_s24, 32  ;;  %p1035_p10 = scmp.lt.s32.totalorder %s758_s24, %s758_s24 }
  0x61   :  { %888 = vmatpush3.bf16.msra.mxu0 %v799_v2  ;;  %v429_v48 = vsub.s32 1, %v1194_v14  ;;  %p1031_p9 = scmp.ne.s32.totalorder %s758_s24, %s1030_s25  ;;  %p1036_p11 = scmp.lt.s32.totalorder %s1030_s25, %s1030_s25 }
  0x62   :  { %851 = vmatprep.subr.bf16.mxu0 %v1075_v3 }
  0x63   :  { %v387_v26 = vstv %s386_s4  ;;  %v391_v31 = vstv %s777_s1  ;;  %p1037_p12 = por %p1036_p11, %p1035_p10 }
  0x64   :  { %833 = vmatmul.mubr.msk.f32.vlgmr.msra.gmra.mrb[0].mxu0 %vm125_vm1, %v124_v4  ;;  %v388_v30 = vsel %vm385_vm5, %v387_v26, 0 }
  0x65   :  { %855 = vmatprep.mubr.msk.bf16.mxu0 %vm1074_vm0, %v1075_v3  ;;  %852 = vmatpush3.bf16.msra.mxu0 %v914_v5  ;;  %v392_v35 = vsel %vm389_vm6, %v391_v31, %v388_v30  ;;  %p1038_p13 = pnand %p1037_p12, %p1031_p9 }
  0x66   :  { %853 = vmatprep.subr.bf16.mxu0 %v1075_v3  ;;  %vm393_vm8 = vcmp.lt.s32.totalorder %v384_v27, %v392_v35  ;;  %v547_v35 = vsub.s32 4, %v1194_v14 }
  0x69   :  { %854 = vmatpush3.bf16.msra.mxu0 %v915_v6 }
  0x6a   :  { %859 = vmatprep.subr.bf16.mxu0 %v1075_v3 }
  0x91   :  { %s900_s15 = spop %899 }
  0x92   :  { %v377_v28 = vstv %s900_s15 }
 0x137   :  { %v195_v8 = vpop.f32.mrb[0].mxu0 }
 0x138   :  { %v834_v9 = vpop.f32.mrb[1].mxu0  ;;  %836 = vmatpush3.msk.msra.mxu1 %vm203_vm2, %v195_v8 }
 0x139   :  { %838 = vmatmul.mubr.msk.f32.vlgmr.msra.gmra.mrb[0].mxu1 %vm199_vm3, %v1182_v7  ;;  %889 = vmatprep.subr.bf16.mxu1 %v1073_v1 }
 0x13a   :  { %848 = vmatprep.mubr.msk.f32.mxu1 %vm1074_vm0, %v1075_v3 }
 0x13f   :  { %892 = vmatpush3.bf16.xpose.msk.msra.mxu1 %vm891_vm4, %v914_v5 }
 0x140   :  { %893 = vmatprep.subr.bf16.mxu1 %v1073_v1 }
 0x147   :  { %896 = vmatpush3.bf16.xpose.msk.msra.mxu1 %vm891_vm4, %v915_v6 }
 0x148   :  { %867 = vmatprep.subr.bf16.mxu1 %v1075_v3 }
 0x20c   :  { %v273_v10 = vpop.f32.mrb[0].mxu1 }
 0x20d   :  { %v839_v11 = vpop.f32.mrb[1].mxu1  ;;  %849 = vmatmul.mubr.msk.f32.vlgmr.msra.gmra.mrb[2].mxu1 %vm125_vm1, %v273_v10 }
 0x20e   :  { %871 = vmatprep.mubr.msk.bf16.mxu1 %vm1074_vm0, %v1075_v3 }
 0x2e0   :  { %v358_v16 = vpop.f32.mrb[2].mxu1 }
 0x2e1   :  { %v362_v17 = vmul.f32 0.17677669, %v358_v16  ;;  %v850_v18 = vpop.f32.mrb[3].mxu1 }
 0x2e2   :  { %v515_v18 = vrot.slane %v1199_v21, 7 }
 0x2e3   :  { %v366_v20 = vrot.slane %v362_v17, %v365_v15  ;;  %v917_v17 = vld [vmem:[#allocation9 + $0x28] sm:$0xff]  }
 0x2e5   :  { %v367_v22 = vmul.f32 %v366_v20, %v1197_v19  ;;  %v368_v24 = vmul.f32 %v366_v20, %v1199_v21  ;;  %v516_v20 = vsel %vm404_vm7, %v515_v18, %v1197_v19 }
 0x2e7   :  { %v369_v23 = vsel %vm125_vm1, %v367_v22, 0.0  ;;  %v372_v25 = vsel %vm125_vm1, %v368_v24, 0.0 }
 0x2e8   :  { %370 = vadd.xlane.f32.xlu0 %v369_v23 }
 0x2ec   :  { %373 = vadd.xlane.f32.xlu0 %v372_v25 }
 0x375   :  { %v371_v29 = vpop.xlane.xlu0 %370 }
 0x376   :  { %v379_v33 = vadd.f32 %v377_v28, %v371_v29  ;;  %v918_v29 = vld [vmem:[#allocation9 + $0x30] sm:$0xff]  }
 0x377   :  { %868 = vmatpush3.bf16.msra.mxu1 %v918_v29 }
 0x378   :  { %v399_v37 = vrot.slane %v379_v33, %v398_v32  ;;  %869 = vmatprep.subr.bf16.mxu1 %v1075_v3 }
 0x379   :  { %v374_v34 = vpop.xlane.xlu0 %373 }
 0x37a   :  { %v380_v36 = vadd.f32 %v377_v28, %v374_v34  ;;  %v920_v34 = vld [vmem:[#allocation9 + $0x40] sm:$0xff]  }
 0x37c   :  { %v403_v38 = vrot.slane %v380_v36, %v398_v32  ;;  %v548_v36 = vrot.slane %v1182_v7, %v547_v35 }
 0x37e   :  { %v405_v39 = vsel %vm404_vm7, %v403_v38, %v399_v37 }
 0x37f   :  { %v407_v40 = vsel %vm393_vm8, %v405_v39, -1e+30 }
 0x380   :  { %v409_v41 = vsel %vm408_vm9, %v407_v40, -inf }
 0x381   :  { %410 = vmax.xlane.f32.xlu1 %v409_v41 }
 0x40e   :  { %v411_v42 = vpop.xlane.xlu1 %410 }
 0x40f   :  { %v412_v43 = vsub.f32 %v407_v40, %v411_v42 }
 0x411   :  { %v413_v44 = vmul.f32 1.442695, %v412_v43 }
 0x413   :  { %922 = vpow2.f32 %v413_v44  ;;  %v921_v44 = vld [vmem:[#allocation9 + $0x48] sm:$0xff]  }
 0x41d   :  { %v923_v45 = vpop.eup %922 }
 0x41e   :  { %v415_v46 = vsel %vm408_vm9, %v923_v45, 0.0 }
 0x41f   :  { %416 = vadd.xlane.f32.xlu1 %v415_v46 }
 0x4ac   :  { %v417_v47 = vpop.xlane.xlu1 %416 }
 0x4ad   :  { %924 = vrcp.f32 %v417_v47 }
 0x4b7   :  { %v925_v49 = vpop.eup %924 }
 0x4b8   :  { %v419_v50 = vmul.f32 %v925_v49, %v923_v45  ;;  %v608_v45 = vsub.s32 5, %v1194_v14 }
 0x4ba   :  { %v430_v51 = vrot.slane %v419_v50, %v429_v48  ;;  %v423_v52 = vrot.slane %v419_v50, %v365_v15  ;;  %v916_v15 = vld [vmem:[#allocation9 + $0x20] sm:$0xff]   ;;  %v609_v46 = vrot.slane %v1182_v7, %v608_v45 }
 0x4bc   :  { %432 = vbcast.lane.b32.xlu1 %v430_v51, 256  ;;  %425 = vbcast.lane.b32.xlu0 %v423_v52, 256 }
 0x52e   :  { %v433_v53 = vpop.permute.xlu1 %432  ;;  %v426_v54 = vpop.permute.xlu0 %425 }
 0x52f   :  { %v435_v55 = vmul.f32 %v433_v53, %v1199_v21  ;;  %v434_v56 = vmul.f32 %v426_v54, %v1197_v19  ;;  %v919_v19 = vld [vmem:[#allocation9 + $0x38] sm:$0xff]  }
 0x530   :  { %870 = vmatpush3.bf16.msra.mxu1 %v919_v19 }
 0x531   :  { %v443_v57 = vsel %vm125_vm1, %v435_v55, 0.0  ;;  %v436_v58 = vsel %vm125_vm1, %v434_v56, 0.0  ;;  %v536_v56 = vsub.s32 2, %v1194_v14 }
 0x532   :  { %v444_v59 = vrot.slane %v443_v57, 4  ;;  %v437_v60 = vrot.slane %v436_v58, 4 }
 0x534   :  { %v445_v61 = vadd.f32 %v444_v59, %v443_v57  ;;  %v438_v62 = vadd.f32 %v437_v60, %v436_v58  ;;  %v669_v58 = vsub.s32 6, %v1194_v14  ;;  %v537_v60 = vrot.slane %v1182_v7, %v536_v56 }
 0x536   :  { %v446_v63 = vrot.slane %v445_v61, 2  ;;  %v439_v0 = vrot.slane %v438_v62, 2 }
 0x538   :  { %v447_v1 = vadd.f32 %v446_v63, %v445_v61  ;;  %v440_v2 = vadd.f32 %v439_v0, %v438_v62  ;;  %v541_v61 = vsub.s32 3, %v1194_v14  ;;  %v670_v62 = vrot.slane %v1182_v7, %v669_v58 }
 0x53a   :  { %v448_v4 = vrot.slane %v447_v1, 1  ;;  %v441_v5 = vrot.slane %v440_v2, 1  ;;  %v542_v0 = vrot.slane %v1182_v7, %v541_v61 }
 0x53c   :  { %v449_v6 = vadd.f32 %v448_v4, %v447_v1  ;;  %v442_v8 = vadd.f32 %v441_v5, %v440_v2 }
 0x53e   :  { %v451_v9 = vpack.c.bf16 %v449_v6, %v449_v6  ;;  %v450_v10 = vpack.c.bf16 %v442_v8, %v442_v8 }
 0x540   :  { %v455_v11 = vunpack.c.l.b16 %v451_v9  ;;  %v454_v12 = vunpack.c.l.b16 %v450_v10 }
 0x542   :  { %v456_v13 = vsel %vm404_vm7, %v455_v11, %v454_v12 }
 0x543   :  { %v457_v16 = vpack.c.b16 %v456_v13, %v456_v13 }
 0x545   :  { %856 = vmatmul.mubr.msk.bf16.vlgmr.msra.gmra.mrb[4].mxu0 %vm125_vm1, %v457_v16 }
 0x546   :  { %860 = vmatpush3.bf16.msra.mxu0 %v916_v15  ;;  %863 = vmatprep.mubr.msk.bf16.mxu0 %vm1074_vm0, %v1075_v3 }
 0x547   :  { %861 = vmatprep.subr.bf16.mxu0 %v1075_v3 }
 0x54a   :  { %862 = vmatpush3.bf16.msra.mxu0 %v917_v17 }
 0x54b   :  { %875 = vmatprep.subr.bf16.mxu0 %v1075_v3 }
 0x618   :  { %v507_v22 = vpop.f32.mrb[4].mxu0 }
 0x619   :  { %v518_v23 = vadd.f32 %v516_v20, %v507_v22  ;;  %v544_v24 = vpack.c.bf16 %v507_v22, %v507_v22  ;;  %v857_v25 = vpop.f32.mrb[5].mxu0  ;;  %v742_v22 = vsub.s32 7, %v1194_v14 }
 0x61a   :  { %v510_v26 = vpop.f32.mrb[6].mxu0 }
 0x61b   :  { %v858_v27 = vpop.f32.mrb[7].mxu0  ;;  %864 = vmatmul.mubr.msk.bf16.vlgmr.msra.gmra.mrb[8].mxu0 %vm125_vm1, %v544_v24  ;;  %v520_v28 = vsel %vm519_vm10, %v518_v23, 0.0  ;;  %v790_v26 = vld [vmem:[#allocation10 + $0x8] ss:$0 sm:$0xff] }
 0x61c   :  { %521 = vadd.xlane.f32.xlu1 %v520_v28  ;;  %879 = vmatprep.mubr.msk.bf16.mxu0 %vm1074_vm0, %v1075_v3 }
 0x61d   :  { %876 = vmatpush3.bf16.msra.mxu0 %v920_v34 }
 0x61e   :  { %877 = vmatprep.subr.bf16.mxu0 %v1075_v3 }
 0x621   :  { %878 = vmatpush3.bf16.msra.mxu0 %v921_v44 }
 0x6a9   :  { %v522_v21 = vpop.xlane.xlu1 %521 }
 0x6aa   :  { %v524_v30 = vmul.f32 0.03125, %v522_v21 }
 0x6ac   :  { %v525_v31 = vsub.f32 %v518_v23, %v524_v30  ;;  %v743_v23 = vrot.slane %v1182_v7, %v742_v22 }
 0x6ae   :  { %v526_v32 = vmul.f32 %v525_v31, %v525_v31 }
 0x6b0   :  { %v527_v33 = vsel %vm519_vm10, %v526_v32, 0.0 }
 0x6b1   :  { %528 = vadd.xlane.f32.xlu0 %v527_v33 }
 0x6ee   :  { %v598_v37 = vpop.f32.mrb[8].mxu0 }
 0x6ef   :  { %v599_v38 = vadd.f32 %v598_v37, %v548_v36  ;;  %v865_v39 = vpop.f32.mrb[9].mxu0 }
 0x6f0   :  { %v601_v40 = vpop.f32.mrb[10].mxu0 }
 0x6f1   :  { %v604_v41 = vmax.f32 %v599_v38, 0.0  ;;  %v866_v42 = vpop.f32.mrb[11].mxu0 }
 0x6f3   :  { %v605_v43 = vpack.c.bf16 %v604_v41, %v604_v41 }
 0x6f5   :  { %872 = vmatmul.mubr.msk.bf16.vlgmr.msra.gmra.mrb[4].mxu1 %vm125_vm1, %v605_v43 }
 0x73e   :  { %v529_v53 = vpop.xlane.xlu0 %528 }
 0x73f   :  { %v530_v54 = vmul.f32 0.03125, %v529_v53 }
 0x741   :  { %v531_v55 = vadd.f32 1e-12, %v530_v54 }
 0x743   :  { %926 = vrsqrt.f32 %v531_v55 }
 0x74d   :  { %v927_v57 = vpop.eup %926 }
 0x74e   :  { %v533_v59 = vmul.f32 %v927_v57, %v525_v31 }
 0x750   :  { %v538_v63 = vmul.f32 %v537_v60, %v533_v59 }
 0x752   :  { %v543_v5 = vadd.f32 %v542_v0, %v538_v63 }
 0x7c8   :  { %v659_v3 = vpop.f32.mrb[4].mxu1 }
 0x7c9   :  { %v660_v47 = vadd.f32 %v659_v3, %v609_v46  ;;  %v873_v48 = vpop.f32.mrb[5].mxu1 }
 0x7ca   :  { %v662_v49 = vpop.f32.mrb[6].mxu1 }
 0x7cb   :  { %v665_v50 = vmax.f32 %v660_v47, 0.0  ;;  %v874_v51 = vpop.f32.mrb[7].mxu1 }
 0x7cd   :  { %v666_v52 = vpack.c.bf16 %v665_v50, %v665_v50 }
 0x7cf   :  { %880 = vmatmul.mubr.msk.bf16.vlgmr.msra.gmra.mrb[12].mxu0 %vm125_vm1, %v666_v52 }
 0x8a2   :  { %v720_v1 = vpop.f32.mrb[12].mxu0 }
 0x8a3   :  { %v721_v2 = vadd.f32 %v720_v1, %v670_v62  ;;  %v881_v4 = vpop.f32.mrb[13].mxu0 }
 0x8a4   :  { %v723_v6 = vpop.f32.mrb[14].mxu0 }
 0x8a5   :  { %v882_v8 = vpop.f32.mrb[15].mxu0  ;;  %v726_v9 = vadd.f32 %v721_v2, %v543_v5 }
 0x8a7   :  { %v727_v10 = vsel %vm519_vm10, %v726_v9, 0.0 }
 0x8a8   :  { %728 = vadd.xlane.f32.xlu0 %v727_v10 }
 0x935   :  { %v729_v11 = vpop.xlane.xlu0 %728 }
 0x936   :  { %v730_v12 = vmul.f32 0.03125, %v729_v11 }
 0x938   :  { %v731_v13 = vsub.f32 %v726_v9, %v730_v12 }
 0x93a   :  { %v732_v15 = vmul.f32 %v731_v13, %v731_v13 }
 0x93c   :  { %v733_v16 = vsel %vm519_vm10, %v732_v15, 0.0 }
 0x93d   :  { %734 = vadd.xlane.f32.xlu1 %v733_v16 }
 0x9ca   :  { %v735_v17 = vpop.xlane.xlu1 %734 }
 0x9cb   :  { %v736_v18 = vmul.f32 0.03125, %v735_v17 }
 0x9cd   :  { %v737_v20 = vadd.f32 1e-12, %v736_v18 }
 0x9cf   :  { %928 = vrsqrt.f32 %v737_v20 }
 0x9d9   :  { %v929_v24 = vpop.eup %928 }
 0x9da   :  { %v739_v25 = vmul.f32 %v929_v24, %v731_v13 }
 0x9dc   :  { %v744_v27 = vmul.f32 %v743_v23, %v739_v25 }
 0x9de   :  { %v749_v28 = vadd.f32 %v790_v26, %v744_v27 }
 0x9e0   :  { %750 = vst.msk [vmem:[#allocation12] sm:$0x3] %vm519_vm10, %v749_v28 }
 0x9e1   :  { %1041 = shalt.err (!%p1038_p13)
}
 0x9e2   :  { %s1042_s0 = scalar_lea.hbm %s1264_s5, 32 }
 0x9e3   :  { %p1043_p0 = scmp.ne.s32.totalorder %s1264_s5, %s1042_s0  ;;  %p1046_p1 = scmp.lt.u32.totalorder %s1042_s0, %s1264_s5 }
 0x9e5   :  { %p1048_p2 = pnand %p1046_p1, %p1043_p0 }
 0x9e7   :  { %1051 = shalt.err (!%p1048_p2)
}
 0x9e8   :  { %760 = dma.vmem_to_hbm [thread:$0]  %s758_s24, 32, %s1264_s5, [#allocation4]  }
 0x9e9   :  { %1062 = dma.done.wait [#allocation4], 32  }
 0x9ea   :  { %1063 = vsyncadd [#allocation4], 4294967264 }
 0x9eb   :  { %764 = vsyncpa [#allocation3], 1 }
 0x9ec   :  { %765 = vsyncpa [#allocation7], 1 }
 0x9ed   :  { %766 = vsyncpa [#allocation11], 1 }
 0x9ee   :  { %767 = vsyncpa [#allocation4], 1 }
 0x9ef   :  { %768 = vsyncpa [#allocation5], 1 }

</bundles_post_ra>
